<compile_context>
chip_gen: v5e
topology: v5e:2x2
jax: 0.10.0
libtpu: 0.0.40
codegen_flags: <defaults>
</compile_context>

<pallas_src>
import jax
import jax.numpy as jnp
from jax.experimental import pallas as pl
from jax.experimental.pallas import tpu as pltpu


def _blr_kernel(x_ref, w_ref, b_ref, o_ref, acc_ref):
    # x_ref: (TM, TK) native dtype, w_ref: (1, TK) f32, b_ref: (1,) f32 in SMEM,
    # o_ref: (TM, 1), acc_ref: (TM, 1) f32 scratch (resident across the k axis).
    k = pl.program_id(1)

    @pl.when(k == 0)
    def _():
        acc_ref[...] = jnp.zeros_like(acc_ref)

    x = x_ref[...].astype(jnp.float32)          # per-tile upcast in VMEM (VPU)
    w = w_ref[...].astype(jnp.float32)          # (1, TK), broadcast over sublanes
    acc_ref[...] += jnp.sum(x * w, axis=-1, keepdims=True)  # VPU mul + XLU reduce

    @pl.when(k == pl.num_programs(1) - 1)
    def _():
        y = acc_ref[...] + b_ref[0]
        # torch.logit(y) with eps=None: log(y) - log1p(-y); NaN/inf outside (0,1).
        o_ref[...] = (jnp.log(y) - jnp.log1p(-y)).astype(o_ref.dtype)


def _vmem_budget_bytes() -> int:
    """Generation-aware VMEM budget for this kernel's allocations."""
    try:
        cap = int(pltpu.get_tpu_info().vmem_capacity_bytes)
    except Exception:
        cap = 64 * 1024 * 1024          # conservative fallback (v7x physical VMEM)
    # At most half of physical VMEM, capped at 48 MiB:
    #   v5e/v6e (128 MiB physical) -> 48 MiB, v7x (64 MiB physical) -> 32 MiB.
    return min(cap // 2, 48 * 1024 * 1024)


def _choose_tiles(batch: int, input_dim: int, itemsize: int, budget: int):
    """Pick (tm, tk): bytes-based batch tile + optional feature (k) tiling."""

    def rows_for(tk: int) -> int:
        # Per batch row in VMEM: double-buffered native-dtype x tile, two f32
        # temporaries (upcast + product), plus the (acc, out) columns.
        per_row = 2 * tk * itemsize + 2 * tk * 4 + 4 * 4
        return max(8, ((budget // per_row) // 8) * 8)

    tk = input_dim
    tm = rows_for(tk)
    # If a full feature row forces tiny batch tiles, split the feature dim into
    # lane-aligned chunks — only when it splits cleanly, so no out-of-bounds
    # garbage ever enters the reduction.
    if tm < 128 and input_dim > 128 and input_dim % 128 == 0:
        for cand in (4096, 2048, 1024, 512, 256, 128):
            if cand < input_dim and input_dim % cand == 0 and rows_for(cand) >= 256:
                tk, tm = cand, rows_for(cand)
                break

    b8 = ((batch + 7) // 8) * 8
    tm = min(tm, b8)
    # Keep at least two batch tiles (when the batch allows it) so the "parallel"
    # axis actually spans both TensorCores on v7x.
    if b8 >= 16 and tm >= b8:
        tm = max(8, ((b8 // 2 + 7) // 8) * 8)
    return tm, tk


def bayesian_linear_regression(x, weight, bias):
    """x: (B, D) float, weight: (1, D) (PyTorch nn.Linear layout), bias: (1,)."""
    B, D = x.shape
    itemsize = jnp.dtype(x.dtype).itemsize

    budget = _vmem_budget_bytes()
    tm, tk = _choose_tiles(B, D, itemsize, budget)
    grid_m = pl.cdiv(B, tm)
    grid_k = pl.cdiv(D, tk)

    w_row = weight.reshape(1, D).astype(jnp.float32)   # VMEM-resident per k-block
    b_smem = bias.reshape(1).astype(jnp.float32)       # 1-D SMEM scalar

    out_dtype = x.dtype
    out_itemsize = jnp.dtype(out_dtype).itemsize

    return pl.pallas_call(
        _blr_kernel,
        out_shape=jax.ShapeDtypeStruct((B, 1), out_dtype),
        grid_spec=pltpu.PrefetchScalarGridSpec(
            num_scalar_prefetch=0,
            grid=(grid_m, grid_k),
            in_specs=[
                # Streamed x tiles (double-buffered by Pallas).
                pl.BlockSpec((tm, tk), lambda i, k: (i, k)),
                # Weight row chunk (tiny, revisited per k).
                pl.BlockSpec((1, tk), lambda i, k: (0, k)),
                # Bias: 1-D scalar in SMEM, off the vector pipeline.
                pl.BlockSpec(memory_space=pltpu.MemorySpace.SMEM),
            ],
            out_specs=pl.BlockSpec((tm, 1), lambda i, k: (i, 0)),
            scratch_shapes=[pltpu.VMEM((tm, 1), jnp.float32)],
        ),
        compiler_params=pltpu.CompilerParams(
            # Batch tiles are independent -> split across TCs; k is a reduction.
            dimension_semantics=("parallel", "arbitrary"),
            vmem_limit_bytes=budget + 8 * 1024 * 1024,
        ),
        cost_estimate=pl.CostEstimate(
            flops=2 * B * D,
            transcendentals=2 * B,
            bytes_accessed=B * D * itemsize + B * out_itemsize + D * 4 + 4,
        ),
    )(x, w_row, b_smem)


if __name__ == "__main__":
    key = jax.random.PRNGKey(0)
    k_x, k_w, k_b = jax.random.split(key, 3)

    batch, input_dim = 8, 32

    # Deterministic "parameters" (mimic nn.Linear(input_dim, 1) init shapes).
    bound = 1.0 / (input_dim ** 0.5)
    weight = jax.random.uniform(k_w, (1, input_dim), jnp.float32, -bound, bound)
    bias = jax.random.uniform(k_b, (1,), jnp.float32, -bound, bound)

    # Inputs chosen so the linear output lands in (0, 1) (valid logit domain).
    x = jax.random.uniform(k_x, (batch, input_dim), jnp.float32, 0.0, 0.2)

    out = bayesian_linear_regression(x, weight, bias)
    jax.block_until_ready(out)

    # Reference check in plain JAX.
    y_ref = x @ weight.T + bias
    ref = jnp.log(y_ref) - jnp.log1p(-y_ref)
    assert out.shape == (batch, 1)
    assert jnp.allclose(out, ref, atol=1e-5, rtol=1e-5), "mismatch vs reference"

    print("KERNEL_OK")
</pallas_src>

<mosaic_0001>
module attributes {stable_mosaic.version = 11 : i64} {
  func.func @_blr_kernel(%arg0: i32, %arg1: i32, %arg2: memref<8x32xf32, #tpu.memory_space<vmem>>, %arg3: memref<1x32xf32, #tpu.memory_space<vmem>>, %arg4: memref<1xf32, #tpu.memory_space<smem>>, %arg5: memref<8x1xf32, #tpu.memory_space<vmem>>, %arg6: memref<8x1xf32, #tpu.memory_space<vmem>>) attributes {dimension_semantics = [#tpu.dimension_semantics<parallel>, #tpu.dimension_semantics<arbitrary>], iteration_bounds = array<i64: 1, 1>, scalar_prefetch = 0 : i64, scratch_operands = 1 : i64, tpu.core_type = #tpu.core_type<tc>, window_params = [{transform_indices = @transform_0, window_bounds = array<i64: 8, 32>}, {transform_indices = @transform_1, window_bounds = array<i64: 1, 32>}, {transform_indices = @transform_2, window_bounds = array<i64: 1>}, {transform_indices = @transform_3, window_bounds = array<i64: 8, 1>}]} {
    %c0_i32 = arith.constant 0 : i32
    %0 = arith.cmpi eq, %arg1, %c0_i32 : i32
    %1 = arith.extui %0 : i1 to i32
    %c0_i32_0 = arith.constant 0 : i32
    %2 = arith.cmpi ne, %1, %c0_i32_0 : i32
    scf.if %2 {
      %cst_10 = arith.constant 0.000000e+00 : f32
      %15 = vector.broadcast %cst_10 : f32 to vector<8x1xf32>
      %c0_11 = arith.constant 0 : index
      %c0_12 = arith.constant 0 : index
      %16 = vector.load %arg6[%c0_11, %c0_12] : memref<8x1xf32, #tpu.memory_space<vmem>>, vector<8x1xf32>
      tpu.vector_store %arg6[%c0_11, %c0_12], %15 {strides = array<i32>} : memref<8x1xf32, #tpu.memory_space<vmem>>, vector<8x1xf32>,
    } else {
    }
    %c0 = arith.constant 0 : index
    %c0_1 = arith.constant 0 : index
    %3 = vector.load %arg2[%c0, %c0_1] : memref<8x32xf32, #tpu.memory_space<vmem>>, vector<8x32xf32>
    %c0_2 = arith.constant 0 : index
    %c0_3 = arith.constant 0 : index
    %4 = vector.load %arg3[%c0_2, %c0_3] : memref<1x32xf32, #tpu.memory_space<vmem>>, vector<1x32xf32>
    %c0_4 = arith.constant 0 : index
    %c0_5 = arith.constant 0 : index
    %5 = vector.load %arg6[%c0_4, %c0_5] : memref<8x1xf32, #tpu.memory_space<vmem>>, vector<8x1xf32>
    %6 = vector.broadcast %4 : vector<1x32xf32> to vector<8x32xf32>
    %7 = arith.mulf %3, %6 : vector<8x32xf32>
    %cst = arith.constant dense<0.000000e+00> : vector<8xf32>
    %8 = vector.multi_reduction <add>, %7, %cst [1] : vector<8x32xf32> to vector<8xf32>
    %9 = vector.shape_cast %8 : vector<8xf32> to vector<8x1xf32>
    %10 = arith.addf %5, %9 : vector<8x1xf32>
    %c0_6 = arith.constant 0 : index
    %c0_7 = arith.constant 0 : index
    %11 = vector.load %arg6[%c0_6, %c0_7] : memref<8x1xf32, #tpu.memory_space<vmem>>, vector<8x1xf32>
    tpu.vector_store %arg6[%c0_6, %c0_7], %10 {strides = array<i32>} : memref<8x1xf32, #tpu.memory_space<vmem>>, vector<8x1xf32>,
    %c0_i32_8 = arith.constant 0 : i32
    %12 = arith.cmpi eq, %arg1, %c0_i32_8 : i32
    %13 = arith.extui %12 : i1 to i32
    %c0_i32_9 = arith.constant 0 : i32
    %14 = arith.cmpi ne, %13, %c0_i32_9 : i32
    scf.if %14 {
      %c0_10 = arith.constant 0 : index
      %c0_11 = arith.constant 0 : index
      %15 = vector.load %arg6[%c0_10, %c0_11] : memref<8x1xf32, #tpu.memory_space<vmem>>, vector<8x1xf32>
      %c0_12 = arith.constant 0 : index
      %16 = memref.load %arg4[%c0_12] : memref<1xf32, #tpu.memory_space<smem>>
      %17 = vector.broadcast %16 : f32 to vector<8x1xf32>
      %18 = arith.addf %15, %17 : vector<8x1xf32>
      %19 = math.log %18 : vector<8x1xf32>
      %cst_13 = arith.constant 0.000000e+00 : f32
      %20 = vector.broadcast %cst_13 : f32 to vector<8x1xf32>
      %21 = arith.subf %20, %18 : vector<8x1xf32>
      %22 = math.log1p %21 : vector<8x1xf32>
      %23 = arith.subf %19, %22 : vector<8x1xf32>
      %c0_14 = arith.constant 0 : index
      %c0_15 = arith.constant 0 : index
      %24 = vector.load %arg5[%c0_14, %c0_15] : memref<8x1xf32, #tpu.memory_space<vmem>>, vector<8x1xf32>
      tpu.vector_store %arg5[%c0_14, %c0_15], %23 {strides = array<i32>} : memref<8x1xf32, #tpu.memory_space<vmem>>, vector<8x1xf32>,
    } else {
    }
    return
  }
  func.func @transform_0(%arg0: i32, %arg1: i32) -> (i32, i32) {
    %c0_i32 = arith.constant 0 : i32
    return %arg0, %arg1 : i32, i32
  }
  func.func @transform_1(%arg0: i32, %arg1: i32) -> (i32, i32) {
    %c0_i32 = arith.constant 0 : i32
    %c0_i32_0 = arith.constant 0 : i32
    return %c0_i32, %arg1 : i32, i32
  }
  func.func @transform_2(%arg0: i32, %arg1: i32) -> i32 {
    %c0_i32 = arith.constant 0 : i32
    %c0_i32_0 = arith.constant 0 : i32
    return %c0_i32 : i32
  }
  func.func @transform_3(%arg0: i32, %arg1: i32) -> (i32, i32) {
    %c0_i32 = arith.constant 0 : i32
    %c0_i32_0 = arith.constant 0 : i32
    return %arg0, %c0_i32 : i32, i32
  }
}

</mosaic_0001>

<bundles_post_ra>
// kernel: tpu_custom_call.1
= control target key start
LH: loop header
LB: loop body
LE: loop exit
PB: predicated region body
PF: predicated region fallthrough
CT: control target
= control target key end

     0   :  { %9 = vsyncpa [#allocation5], 0  ;;  %s108_s15 = smov [#allocation4]   ;;  %s145_s0 = inlined_call_operand.hbm [shape: f32[8,32], index: 0, kind: input, shape index: {}]   ;;  %s146_s1 = inlined_call_operand.vmem [shape: f32[1,32], index: 1, kind: input, shape index: {}]   ;;  %s147_s2 = inlined_call_operand.<no memory space> [shape: f32[1], index: 2, kind: input, shape index: {}]   ;;  %s148_s3 = inlined_call_operand.vmem [shape: f32[8,1], index: 3, kind: output, shape index: {}]  }
   0x1   :  { %s15_s14 = sshll.u32 %s145_s0, 4  ;;  %s17_s16 = sshll.u32 %s108_s15, 4  ;;  %s16_s14 = int_to_ptr.hbm [resolvable:$true] %s15_s14  ;;  %s18_s16 = int_to_ptr.vmem [resolvable:$true] %s17_s16 }
   0x2   :  { %20 = dma.hbm_to_vmem [thread:$0]  %s16_s14, 128, %s18_s16, [#allocation5]  }
   0x3   :  { %106 = dma.done.wait [#allocation5], 128  }
   0x4   :  { %107 = vsyncadd [#allocation5], 4294967168  ;;  %vm33_vm0 = vcmask 7168   ;;  %v109_v0 = vmov 0.0   ;;  %v35_v1 = vld [vmem:[#allocation4] sm:$0xff]  ;;  %vm42_vm1 = vcmask 261120   ;;  %v54_v8 = vstv %s147_s2 }
   0x5   :  { %34 = vst.msk [vmem:[#allocation2] sm:$0xff] %vm33_vm0, %v109_v0  ;;  %v77_v2 = vld [vmem:[%s146_s1] ss:$0 sm:$0xff] }
   0x6   :  { %v41_v3 = vmul.f32 %v77_v2, %v35_v1 }
   0x8   :  { %v43_v4 = vsel %vm42_vm1, %v41_v3, 0.0 }
   0x9   :  { %44 = vadd.xlane.f32.xlu0 %v43_v4 }
   0xc   :  { %v37_v5 = vld [vmem:[#allocation2] sm:$0xff] }
  0x7c   :  { %v45_v6 = vpop.xlane.xlu0 %44 }
  0x7d   :  { %v46_v7 = vadd.f32 %v45_v6, %v37_v5 }
  0x7f   :  { %48 = vst.msk [vmem:[#allocation2] sm:$0xff] %vm33_vm0, %v46_v7 }
  0x86   :  { %v52_v9 = vld [vmem:[#allocation2] sm:$0xff] }
  0x87   :  { %v55_v10 = vadd.f32 %v54_v8, %v52_v9 }
  0x89   :  { %v58_v11 = vsub.f32 0.0, %v55_v10  ;;  %78 = vlog2.f32 %v55_v10 }
  0x8b   :  { %v59_v12 = vadd.f32 1.0, %v58_v11  ;;  %v62_v13 = vmul.f32 -0.5, %v58_v11  ;;  %v65_v15 = vand.u32 2147483647, %v58_v11 }
  0x8d   :  { %80 = vlog2.f32 %v59_v12  ;;  %v63_v14 = vadd.f32 1.0, %v62_v13  ;;  %vm66_vm2 = vcmp.lt.f32.partialorder %v65_v15, 0.0004427343 }
  0x8f   :  { %v79_v16 = vpop.eup %78  ;;  %v64_v19 = vmul.f32 %v63_v14, %v58_v11 }
  0x90   :  { %v57_v20 = vmul.f32 0.6931472, %v79_v16 }
  0x93   :  { %v81_v17 = vpop.eup %80 }
  0x94   :  { %v61_v18 = vmul.f32 0.6931472, %v81_v17 }
  0x96   :  { %v67_v21 = vsel %vm66_vm2, %v64_v19, %v61_v18 }
  0x97   :  { %v68_v22 = vsub.f32 %v57_v20, %v67_v21 }
  0x99   :  { %69 = vst.msk [vmem:[%s148_s3] sm:$0xff] %vm33_vm0, %v68_v22 }
  0x9a   :  { %74 = vsyncpa [#allocation5], 1 }

</bundles_post_ra>
